<compile_context>
chip_gen: v7x
topology: tpu7x:2x2x1
jax: 0.10.0
libtpu: 0.0.40
codegen_flags: <defaults>
</compile_context>

<pallas_src>
import functools

import jax
import jax.numpy as jnp
import numpy as np
from jax import lax
from jax.experimental import pallas as pl
from jax.experimental.pallas import tpu as pltpu

jax.config.update("jax_default_matmul_precision", "highest")


def lstm_kernel(x_ref, w_ih_ref, w_hh_ref, b_ref, gamma_ref, beta_ref,
                w_fc_ref, b_fc_ref, out_ref, h_scr, c_scr, g_scr):
    """One grid step = one time-chunk of the recurrence.

    x_ref       : (Tc*Bp, I)   time-major rows of this chunk (row = t*Bp + b)
    g_scr       : (Tc*Bp, 4H)  VMEM scratch for the hoisted input projection
    h_scr/c_scr : (Bp, H)      VMEM scratch, persistent across grid steps (the carry)
    out_ref     : (Bp, O)      written only on the last grid step
    """
    t_chunk = pl.program_id(0)
    n_rows = x_ref.shape[0]
    Bp, H = h_scr.shape
    Tc = n_rows // Bp

    @pl.when(t_chunk == 0)
    def _init():
        h_scr[...] = jnp.zeros_like(h_scr)
        c_scr[...] = jnp.zeros_like(c_scr)

    # Hoisted input projection: ONE MXU matmul with M = Tc*Bp for the whole chunk,
    # bias folded in here (no per-step broadcast on the serial critical path).
    g_scr[...] = (jnp.dot(x_ref[...], w_ih_ref[...],
                          preferred_element_type=jnp.float32) + b_ref[...])

    w_hh = w_hh_ref[...]  # resident (constant block index across the grid)

    def step(t, carry):
        h, c = carry
        row0 = pl.multiple_of(t * Bp, 8)          # Bp is a multiple of 8 -> aligned slice
        gates = (g_scr[pl.ds(row0, Bp), :]
                 + jnp.dot(h, w_hh, preferred_element_type=jnp.float32))
        # Gate order [i, f, g, o] (PyTorch). NOTE: for production sizes make H a
        # multiple of 128 so these lane slices are vreg-dense.
        i = jax.nn.sigmoid(gates[:, 0 * H:1 * H])
        f = jax.nn.sigmoid(gates[:, 1 * H:2 * H])
        g = jnp.tanh(gates[:, 2 * H:3 * H])
        o = jax.nn.sigmoid(gates[:, 3 * H:4 * H])
        c_new = f * c + i * g
        h_new = o * jnp.tanh(c_new)
        return h_new, c_new

    # Fully unrolled so the scheduler can overlap step t's h@W_hh MXU push with
    # step t-1's VPU/EUP gate math (only the h data-dependence truly serializes).
    h, c = lax.fori_loop(0, Tc, step, (h_scr[...], c_scr[...]), unroll=True)
    h_scr[...] = h
    c_scr[...] = c

    @pl.when(t_chunk == pl.num_programs(0) - 1)
    def _finalize():
        # LayerNorm over the hidden dim (eps=1e-5, biased variance). LayerNorm is
        # per-timestep, so norm(seq)[:, -1, :] == norm(h_last).
        mu = jnp.mean(h, axis=-1, keepdims=True)
        var = jnp.mean((h - mu) ** 2, axis=-1, keepdims=True)
        hn = (h - mu) * lax.rsqrt(var + 1e-5)
        hn = hn * gamma_ref[...] + beta_ref[...]
        # Dropout: identity at inference time (eval mode).
        # TODO(synk): training-mode dropout (pltpu.prng_random_bits mask) not emitted.
        logits = (jnp.dot(hn, w_fc_ref[...], preferred_element_type=jnp.float32)
                  + b_fc_ref[...])
        # TODO(synk): O=4 -> masked store; pad O toward 128 lanes for production sizes.
        out_ref[...] = jax.nn.sigmoid(logits)


@functools.partial(jax.jit, static_argnames=("time_chunk",))
def lstm_forward(x_btd, w_ih, w_hh, b, gamma, beta, w_fc, b_fc, *, time_chunk=4):
    """x_btd: (B, T, input_size), PyTorch batch_first layout. Returns (B, output_size)."""
    B, T, I = x_btd.shape
    H = w_hh.shape[0]
    O = w_fc.shape[1]
    assert T % time_chunk == 0, "T must be divisible by time_chunk"
    # TODO(synk): ragged T (T % time_chunk != 0) would need per-step validity masking.

    # Pad batch to a multiple of 8 (f32 sublanes) so every per-step tile and every
    # gates-scratch row slice is sublane-aligned.
    Bp = max(8, ((B + 7) // 8) * 8)
    x_p = jnp.pad(x_btd.astype(jnp.float32), ((0, Bp - B), (0, 0), (0, 0)))
    # Time-major 2-D layout (row = t*Bp + b): lets the per-chunk input projection be a
    # single dense 2-D matmul with no in-kernel relayout. x is the smallest tensor, so
    # this single extra wrapper pass over x is cheap.
    x_2d = jnp.transpose(x_p, (1, 0, 2)).reshape(T * Bp, I)

    n_chunks = T // time_chunk
    rows_per_chunk = time_chunk * Bp

    def full(a):
        nd = a.ndim
        return pl.BlockSpec(a.shape, lambda t, _nd=nd: (0,) * _nd)

    flops = 2 * T * Bp * I * 4 * H + 2 * T * Bp * H * 4 * H + 2 * Bp * H * O
    transcendentals = T * Bp * 5 * H + Bp * O
    bytes_accessed = 4 * (x_2d.size + w_ih.size + w_hh.size + b.size + gamma.size
                          + beta.size + w_fc.size + b_fc.size + Bp * O)

    # VMEM plan: double-buffered x chunk + resident weights + scratch + out (f32 bytes).
    need = 4 * (2 * rows_per_chunk * I
                + 2 * (w_ih.size + w_hh.size + b.size + gamma.size + beta.size
                       + w_fc.size + b_fc.size)
                + 2 * Bp * H + rows_per_chunk * 4 * H
                + 2 * Bp * O)
    vmem_limit = int(min(64 * 2 ** 20, max(4 * 2 ** 20, 2 * need)))

    out = pl.pallas_call(
        lstm_kernel,
        out_shape=jax.ShapeDtypeStruct((Bp, O), jnp.float32),
        grid_spec=pltpu.PrefetchScalarGridSpec(
            num_scalar_prefetch=0,
            grid=(n_chunks,),
            in_specs=[
                pl.BlockSpec((rows_per_chunk, I), lambda t: (t, 0)),  # streamed x chunks
                full(w_ih), full(w_hh), full(b), full(gamma), full(beta),
                full(w_fc), full(b_fc),
            ],
            out_specs=pl.BlockSpec((Bp, O), lambda t: (0, 0)),
            scratch_shapes=[
                pltpu.VMEM((Bp, H), jnp.float32),                   # h carry
                pltpu.VMEM((Bp, H), jnp.float32),                   # c carry
                pltpu.VMEM((rows_per_chunk, 4 * H), jnp.float32),   # hoisted gates
            ]),
        compiler_params=pltpu.CompilerParams(
            dimension_semantics=("arbitrary",),   # serial recurrence over time chunks
            vmem_limit_bytes=vmem_limit),
        cost_estimate=pl.CostEstimate(
            flops=int(flops),
            transcendentals=int(transcendentals),
            bytes_accessed=int(bytes_accessed)),
    )(x_2d, w_ih, w_hh, b, gamma, beta, w_fc, b_fc)
    # TODO(synk): for v7x, add a leading 'parallel' batch-grid axis so the two
    # TensorCores each run an independent batch slice of the recurrence.
    return out[:B]


def init_params(key, input_size, hidden_size, output_size):
    k1, k2, k3, k4, k5 = jax.random.split(key, 5)
    kbound = 1.0 / np.sqrt(hidden_size)          # PyTorch nn.LSTM default init
    w_ih = jax.random.uniform(k1, (input_size, 4 * hidden_size), jnp.float32,
                              -kbound, kbound)
    w_hh = jax.random.uniform(k2, (hidden_size, 4 * hidden_size), jnp.float32,
                              -kbound, kbound)
    b_ih = jax.random.uniform(k3, (4 * hidden_size,), jnp.float32, -kbound, kbound)
    b_hh = jax.random.uniform(k4, (4 * hidden_size,), jnp.float32, -kbound, kbound)
    b = (b_ih + b_hh).reshape(1, 4 * hidden_size)
    gamma = jnp.ones((1, hidden_size), jnp.float32)               # LayerNorm weight
    beta = jnp.zeros((1, hidden_size), jnp.float32)               # LayerNorm bias
    xbound = np.sqrt(6.0 / (hidden_size + output_size))           # xavier_uniform_
    w_fc = jax.random.uniform(k5, (hidden_size, output_size), jnp.float32,
                              -xbound, xbound)
    b_fc = jnp.zeros((1, output_size), jnp.float32)               # zeros_(bias)
    return w_ih, w_hh, b, gamma, beta, w_fc, b_fc


def reference_forward(x_btd, w_ih, w_hh, b, gamma, beta, w_fc, b_fc):
    """Plain-JAX reference mirroring the PyTorch module (eval mode)."""
    B, T, _ = x_btd.shape
    H = w_hh.shape[0]
    h = jnp.zeros((B, H), jnp.float32)
    c = jnp.zeros((B, H), jnp.float32)
    for t in range(T):
        gates = x_btd[:, t, :] @ w_ih + h @ w_hh + b
        i = jax.nn.sigmoid(gates[:, 0 * H:1 * H])
        f = jax.nn.sigmoid(gates[:, 1 * H:2 * H])
        g = jnp.tanh(gates[:, 2 * H:3 * H])
        o = jax.nn.sigmoid(gates[:, 3 * H:4 * H])
        c = f * c + i * g
        h = o * jnp.tanh(c)
    mu = jnp.mean(h, axis=-1, keepdims=True)
    var = jnp.mean((h - mu) ** 2, axis=-1, keepdims=True)
    hn = (h - mu) / jnp.sqrt(var + 1e-5) * gamma + beta
    return jax.nn.sigmoid(hn @ w_fc + b_fc)


if __name__ == "__main__":
    B, T = 2, 8
    input_size, hidden_size, output_size = 4, 32, 4

    key = jax.random.PRNGKey(0)
    kx, kp = jax.random.split(key)
    x = jax.random.normal(kx, (B, T, input_size), jnp.float32)
    params = init_params(kp, input_size, hidden_size, output_size)

    out = lstm_forward(x, *params, time_chunk=4)   # grid = (2,) -> exercises streaming
    out = jax.block_until_ready(out)

    ref = reference_forward(x, *params)
    np.testing.assert_allclose(np.asarray(out), np.asarray(ref), rtol=1e-3, atol=1e-3)
    assert out.shape == (B, output_size)
    print("KERNEL_OK")
</pallas_src>

<mosaic_0001>
module attributes {stable_mosaic.version = 11 : i64} {
  func.func @lstm_kernel(%arg0: i32, %arg1: memref<32x4xf32, #tpu.memory_space<vmem>>, %arg2: memref<4x128xf32, #tpu.memory_space<vmem>>, %arg3: memref<32x128xf32, #tpu.memory_space<vmem>>, %arg4: memref<1x128xf32, #tpu.memory_space<vmem>>, %arg5: memref<1x32xf32, #tpu.memory_space<vmem>>, %arg6: memref<1x32xf32, #tpu.memory_space<vmem>>, %arg7: memref<32x4xf32, #tpu.memory_space<vmem>>, %arg8: memref<1x4xf32, #tpu.memory_space<vmem>>, %arg9: memref<8x4xf32, #tpu.memory_space<vmem>>, %arg10: memref<8x32xf32, #tpu.memory_space<vmem>>, %arg11: memref<8x32xf32, #tpu.memory_space<vmem>>, %arg12: memref<32x128xf32, #tpu.memory_space<vmem>>) attributes {dimension_semantics = [#tpu.dimension_semantics<arbitrary>], iteration_bounds = array<i64: 2>, scalar_prefetch = 0 : i64, scratch_operands = 3 : i64, tpu.core_type = #tpu.core_type<tc>, window_params = [{transform_indices = @transform_0, window_bounds = array<i64: 32, 4>}, {pipeline_mode = #tpu.pipeline_mode<synchronous>, transform_indices = @transform_1, window_bounds = array<i64: 4, 128>}, {pipeline_mode = #tpu.pipeline_mode<synchronous>, transform_indices = @transform_2, window_bounds = array<i64: 32, 128>}, {pipeline_mode = #tpu.pipeline_mode<synchronous>, transform_indices = @transform_3, window_bounds = array<i64: 1, 128>}, {pipeline_mode = #tpu.pipeline_mode<synchronous>, transform_indices = @transform_4, window_bounds = array<i64: 1, 32>}, {pipeline_mode = #tpu.pipeline_mode<synchronous>, transform_indices = @transform_5, window_bounds = array<i64: 1, 32>}, {pipeline_mode = #tpu.pipeline_mode<synchronous>, transform_indices = @transform_6, window_bounds = array<i64: 32, 4>}, {pipeline_mode = #tpu.pipeline_mode<synchronous>, transform_indices = @transform_7, window_bounds = array<i64: 1, 4>}, {pipeline_mode = #tpu.pipeline_mode<synchronous>, transform_indices = @transform_8, window_bounds = array<i64: 8, 4>}]} {
    %c0_i32 = arith.constant 0 : i32
    %0 = arith.cmpi eq, %arg0, %c0_i32 : i32
    %1 = arith.extui %0 : i1 to i32
    %c0_i32_0 = arith.constant 0 : i32
    %2 = arith.cmpi ne, %1, %c0_i32_0 : i32
    scf.if %2 {
      %cst_44 = arith.constant 0.000000e+00 : f32
      %142 = vector.broadcast %cst_44 : f32 to vector<8x32xf32>
      %c0_45 = arith.constant 0 : index
      %c0_46 = arith.constant 0 : index
      %143 = vector.load %arg10[%c0_45, %c0_46] : memref<8x32xf32, #tpu.memory_space<vmem>>, vector<8x32xf32>
      tpu.vector_store %arg10[%c0_45, %c0_46], %142 {strides = array<i32>} : memref<8x32xf32, #tpu.memory_space<vmem>>, vector<8x32xf32>,
      %cst_47 = arith.constant 0.000000e+00 : f32
      %144 = vector.broadcast %cst_47 : f32 to vector<8x32xf32>
      %c0_48 = arith.constant 0 : index
      %c0_49 = arith.constant 0 : index
      %145 = vector.load %arg11[%c0_48, %c0_49] : memref<8x32xf32, #tpu.memory_space<vmem>>, vector<8x32xf32>
      tpu.vector_store %arg11[%c0_48, %c0_49], %144 {strides = array<i32>} : memref<8x32xf32, #tpu.memory_space<vmem>>, vector<8x32xf32>,
    } else {
    }
    %c0 = arith.constant 0 : index
    %c0_1 = arith.constant 0 : index
    %3 = vector.load %arg1[%c0, %c0_1] : memref<32x4xf32, #tpu.memory_space<vmem>>, vector<32x4xf32>
    %c0_2 = arith.constant 0 : index
    %c0_3 = arith.constant 0 : index
    %4 = vector.load %arg2[%c0_2, %c0_3] : memref<4x128xf32, #tpu.memory_space<vmem>>, vector<4x128xf32>
    %cst = arith.constant dense<0.000000e+00> : vector<32x128xf32>
    %5 = tpu.matmul %3, %4, %cst {dimension_numbers = #tpu.dot_dimension_numbers<[1], [0], [0], [1], [0, 0, 1, 1], [], []>, precision = #tpu.contract_precision<fp32>} : vector<32x4xf32>, vector<4x128xf32>, vector<32x128xf32> -> vector<32x128xf32>
    %c0_4 = arith.constant 0 : index
    %c0_5 = arith.constant 0 : index
    %6 = vector.load %arg4[%c0_4, %c0_5] : memref<1x128xf32, #tpu.memory_space<vmem>>, vector<1x128xf32>
    %7 = vector.broadcast %6 : vector<1x128xf32> to vector<32x128xf32>
    %8 = arith.addf %5, %7 : vector<32x128xf32>
    %c0_6 = arith.constant 0 : index
    %c0_7 = arith.constant 0 : index
    %9 = vector.load %arg12[%c0_6, %c0_7] : memref<32x128xf32, #tpu.memory_space<vmem>>, vector<32x128xf32>
    tpu.vector_store %arg12[%c0_6, %c0_7], %8 {strides = array<i32>} : memref<32x128xf32, #tpu.memory_space<vmem>>, vector<32x128xf32>,
    %c0_8 = arith.constant 0 : index
    %c0_9 = arith.constant 0 : index
    %10 = vector.load %arg3[%c0_8, %c0_9] : memref<32x128xf32, #tpu.memory_space<vmem>>, vector<32x128xf32>
    %c0_10 = arith.constant 0 : index
    %c0_11 = arith.constant 0 : index
    %11 = vector.load %arg10[%c0_10, %c0_11] : memref<8x32xf32, #tpu.memory_space<vmem>>, vector<8x32xf32>
    %c0_12 = arith.constant 0 : index
    %c0_13 = arith.constant 0 : index
    %12 = vector.load %arg11[%c0_12, %c0_13] : memref<8x32xf32, #tpu.memory_space<vmem>>, vector<8x32xf32>
    %c0_i32_14 = arith.constant 0 : i32
    %c8_i32 = arith.constant 8 : i32
    %13 = arith.muli %c0_i32_14, %c8_i32 : i32
    %14 = tpu.assume_multiple %13, 8 : i32
    %15 = arith.index_cast %14 : i32 to index
    %c0_15 = arith.constant 0 : index
    %16 = vector.load %arg12[%15, %c0_15] : memref<32x128xf32, #tpu.memory_space<vmem>>, vector<8x128xf32>
    %cst_16 = arith.constant dense<0.000000e+00> : vector<8x128xf32>
    %17 = tpu.matmul %11, %10, %cst_16 {dimension_numbers = #tpu.dot_dimension_numbers<[1], [0], [0], [1], [0, 0, 1, 1], [], []>, precision = #tpu.contract_precision<fp32>} : vector<8x32xf32>, vector<32x128xf32>, vector<8x128xf32> -> vector<8x128xf32>
    %18 = arith.addf %16, %17 : vector<8x128xf32>
    %19 = vector.extract_strided_slice %18 {offsets = [0, 0], sizes = [8, 32], strides = [1, 1]} : vector<8x128xf32> to vector<8x32xf32>
    %20 = arith.negf %19 : vector<8x32xf32>
    %21 = math.exp %20 : vector<8x32xf32>
    %cst_17 = arith.constant 1.000000e+00 : f32
    %22 = vector.broadcast %cst_17 : f32 to vector<8x32xf32>
    %23 = arith.addf %22, %21 : vector<8x32xf32>
    %24 = arith.divf %22, %23 : vector<8x32xf32>
    %25 = vector.extract_strided_slice %18 {offsets = [0, 32], sizes = [8, 32], strides = [1, 1]} : vector<8x128xf32> to vector<8x32xf32>
    %26 = arith.negf %25 : vector<8x32xf32>
    %27 = math.exp %26 : vector<8x32xf32>
    %cst_18 = arith.constant 1.000000e+00 : f32
    %28 = vector.broadcast %cst_18 : f32 to vector<8x32xf32>
    %29 = arith.addf %28, %27 : vector<8x32xf32>
    %30 = arith.divf %28, %29 : vector<8x32xf32>
    %31 = vector.extract_strided_slice %18 {offsets = [0, 64], sizes = [8, 32], strides = [1, 1]} : vector<8x128xf32> to vector<8x32xf32>
    %32 = math.tanh %31 : vector<8x32xf32>
    %33 = vector.extract_strided_slice %18 {offsets = [0, 96], sizes = [8, 32], strides = [1, 1]} : vector<8x128xf32> to vector<8x32xf32>
    %34 = arith.negf %33 : vector<8x32xf32>
    %35 = math.exp %34 : vector<8x32xf32>
    %cst_19 = arith.constant 1.000000e+00 : f32
    %36 = vector.broadcast %cst_19 : f32 to vector<8x32xf32>
    %37 = arith.addf %36, %35 : vector<8x32xf32>
    %38 = arith.divf %36, %37 : vector<8x32xf32>
    %39 = arith.mulf %30, %12 : vector<8x32xf32>
    %40 = arith.mulf %24, %32 : vector<8x32xf32>
    %41 = arith.addf %39, %40 : vector<8x32xf32>
    %42 = math.tanh %41 : vector<8x32xf32>
    %43 = arith.mulf %38, %42 : vector<8x32xf32>
    %c1_i32 = arith.constant 1 : i32
    %c8_i32_20 = arith.constant 8 : i32
    %44 = arith.muli %c1_i32, %c8_i32_20 : i32
    %45 = tpu.assume_multiple %44, 8 : i32
    %46 = arith.index_cast %45 : i32 to index
    %c0_21 = arith.constant 0 : index
    %47 = vector.load %arg12[%46, %c0_21] : memref<32x128xf32, #tpu.memory_space<vmem>>, vector<8x128xf32>
    %cst_22 = arith.constant dense<0.000000e+00> : vector<8x128xf32>
    %48 = tpu.matmul %43, %10, %cst_22 {dimension_numbers = #tpu.dot_dimension_numbers<[1], [0], [0], [1], [0, 0, 1, 1], [], []>, precision = #tpu.contract_precision<fp32>} : vector<8x32xf32>, vector<32x128xf32>, vector<8x128xf32> -> vector<8x128xf32>
    %49 = arith.addf %47, %48 : vector<8x128xf32>
    %50 = vector.extract_strided_slice %49 {offsets = [0, 0], sizes = [8, 32], strides = [1, 1]} : vector<8x128xf32> to vector<8x32xf32>
    %51 = arith.negf %50 : vector<8x32xf32>
    %52 = math.exp %51 : vector<8x32xf32>
    %cst_23 = arith.constant 1.000000e+00 : f32
    %53 = vector.broadcast %cst_23 : f32 to vector<8x32xf32>
    %54 = arith.addf %53, %52 : vector<8x32xf32>
    %55 = arith.divf %53, %54 : vector<8x32xf32>
    %56 = vector.extract_strided_slice %49 {offsets = [0, 32], sizes = [8, 32], strides = [1, 1]} : vector<8x128xf32> to vector<8x32xf32>
    %57 = arith.negf %56 : vector<8x32xf32>
    %58 = math.exp %57 : vector<8x32xf32>
    %cst_24 = arith.constant 1.000000e+00 : f32
    %59 = vector.broadcast %cst_24 : f32 to vector<8x32xf32>
    %60 = arith.addf %59, %58 : vector<8x32xf32>
    %61 = arith.divf %59, %60 : vector<8x32xf32>
    %62 = vector.extract_strided_slice %49 {offsets = [0, 64], sizes = [8, 32], strides = [1, 1]} : vector<8x128xf32> to vector<8x32xf32>
    %63 = math.tanh %62 : vector<8x32xf32>
    %64 = vector.extract_strided_slice %49 {offsets = [0, 96], sizes = [8, 32], strides = [1, 1]} : vector<8x128xf32> to vector<8x32xf32>
    %65 = arith.negf %64 : vector<8x32xf32>
    %66 = math.exp %65 : vector<8x32xf32>
    %cst_25 = arith.constant 1.000000e+00 : f32
    %67 = vector.broadcast %cst_25 : f32 to vector<8x32xf32>
    %68 = arith.addf %67, %66 : vector<8x32xf32>
    %69 = arith.divf %67, %68 : vector<8x32xf32>
    %70 = arith.mulf %61, %41 : vector<8x32xf32>
    %71 = arith.mulf %55, %63 : vector<8x32xf32>
    %72 = arith.addf %70, %71 : vector<8x32xf32>
    %73 = math.tanh %72 : vector<8x32xf32>
    %74 = arith.mulf %69, %73 : vector<8x32xf32>
    %c2_i32 = arith.constant 2 : i32
    %c8_i32_26 = arith.constant 8 : i32
    %75 = arith.muli %c2_i32, %c8_i32_26 : i32
    %76 = tpu.assume_multiple %75, 8 : i32
    %77 = arith.index_cast %76 : i32 to index
    %c0_27 = arith.constant 0 : index
    %78 = vector.load %arg12[%77, %c0_27] : memref<32x128xf32, #tpu.memory_space<vmem>>, vector<8x128xf32>
    %cst_28 = arith.constant dense<0.000000e+00> : vector<8x128xf32>
    %79 = tpu.matmul %74, %10, %cst_28 {dimension_numbers = #tpu.dot_dimension_numbers<[1], [0], [0], [1], [0, 0, 1, 1], [], []>, precision = #tpu.contract_precision<fp32>} : vector<8x32xf32>, vector<32x128xf32>, vector<8x128xf32> -> vector<8x128xf32>
    %80 = arith.addf %78, %79 : vector<8x128xf32>
    %81 = vector.extract_strided_slice %80 {offsets = [0, 0], sizes = [8, 32], strides = [1, 1]} : vector<8x128xf32> to vector<8x32xf32>
    %82 = arith.negf %81 : vector<8x32xf32>
    %83 = math.exp %82 : vector<8x32xf32>
    %cst_29 = arith.constant 1.000000e+00 : f32
    %84 = vector.broadcast %cst_29 : f32 to vector<8x32xf32>
    %85 = arith.addf %84, %83 : vector<8x32xf32>
    %86 = arith.divf %84, %85 : vector<8x32xf32>
    %87 = vector.extract_strided_slice %80 {offsets = [0, 32], sizes = [8, 32], strides = [1, 1]} : vector<8x128xf32> to vector<8x32xf32>
    %88 = arith.negf %87 : vector<8x32xf32>
    %89 = math.exp %88 : vector<8x32xf32>
    %cst_30 = arith.constant 1.000000e+00 : f32
    %90 = vector.broadcast %cst_30 : f32 to vector<8x32xf32>
    %91 = arith.addf %90, %89 : vector<8x32xf32>
    %92 = arith.divf %90, %91 : vector<8x32xf32>
    %93 = vector.extract_strided_slice %80 {offsets = [0, 64], sizes = [8, 32], strides = [1, 1]} : vector<8x128xf32> to vector<8x32xf32>
    %94 = math.tanh %93 : vector<8x32xf32>
    %95 = vector.extract_strided_slice %80 {offsets = [0, 96], sizes = [8, 32], strides = [1, 1]} : vector<8x128xf32> to vector<8x32xf32>
    %96 = arith.negf %95 : vector<8x32xf32>
    %97 = math.exp %96 : vector<8x32xf32>
    %cst_31 = arith.constant 1.000000e+00 : f32
    %98 = vector.broadcast %cst_31 : f32 to vector<8x32xf32>
    %99 = arith.addf %98, %97 : vector<8x32xf32>
    %100 = arith.divf %98, %99 : vector<8x32xf32>
    %101 = arith.mulf %92, %72 : vector<8x32xf32>
    %102 = arith.mulf %86, %94 : vector<8x32xf32>
    %103 = arith.addf %101, %102 : vector<8x32xf32>
    %104 = math.tanh %103 : vector<8x32xf32>
    %105 = arith.mulf %100, %104 : vector<8x32xf32>
    %c3_i32 = arith.constant 3 : i32
    %c8_i32_32 = arith.constant 8 : i32
    %106 = arith.muli %c3_i32, %c8_i32_32 : i32
    %107 = tpu.assume_multiple %106, 8 : i32
    %108 = arith.index_cast %107 : i32 to index
    %c0_33 = arith.constant 0 : index
    %109 = vector.load %arg12[%108, %c0_33] : memref<32x128xf32, #tpu.memory_space<vmem>>, vector<8x128xf32>
    %cst_34 = arith.constant dense<0.000000e+00> : vector<8x128xf32>
    %110 = tpu.matmul %105, %10, %cst_34 {dimension_numbers = #tpu.dot_dimension_numbers<[1], [0], [0], [1], [0, 0, 1, 1], [], []>, precision = #tpu.contract_precision<fp32>} : vector<8x32xf32>, vector<32x128xf32>, vector<8x128xf32> -> vector<8x128xf32>
    %111 = arith.addf %109, %110 : vector<8x128xf32>
    %112 = vector.extract_strided_slice %111 {offsets = [0, 0], sizes = [8, 32], strides = [1, 1]} : vector<8x128xf32> to vector<8x32xf32>
    %113 = arith.negf %112 : vector<8x32xf32>
    %114 = math.exp %113 : vector<8x32xf32>
    %cst_35 = arith.constant 1.000000e+00 : f32
    %115 = vector.broadcast %cst_35 : f32 to vector<8x32xf32>
    %116 = arith.addf %115, %114 : vector<8x32xf32>
    %117 = arith.divf %115, %116 : vector<8x32xf32>
    %118 = vector.extract_strided_slice %111 {offsets = [0, 32], sizes = [8, 32], strides = [1, 1]} : vector<8x128xf32> to vector<8x32xf32>
    %119 = arith.negf %118 : vector<8x32xf32>
    %120 = math.exp %119 : vector<8x32xf32>
    %cst_36 = arith.constant 1.000000e+00 : f32
    %121 = vector.broadcast %cst_36 : f32 to vector<8x32xf32>
    %122 = arith.addf %121, %120 : vector<8x32xf32>
    %123 = arith.divf %121, %122 : vector<8x32xf32>
    %124 = vector.extract_strided_slice %111 {offsets = [0, 64], sizes = [8, 32], strides = [1, 1]} : vector<8x128xf32> to vector<8x32xf32>
    %125 = math.tanh %124 : vector<8x32xf32>
    %126 = vector.extract_strided_slice %111 {offsets = [0, 96], sizes = [8, 32], strides = [1, 1]} : vector<8x128xf32> to vector<8x32xf32>
    %127 = arith.negf %126 : vector<8x32xf32>
    %128 = math.exp %127 : vector<8x32xf32>
    %cst_37 = arith.constant 1.000000e+00 : f32
    %129 = vector.broadcast %cst_37 : f32 to vector<8x32xf32>
    %130 = arith.addf %129, %128 : vector<8x32xf32>
    %131 = arith.divf %129, %130 : vector<8x32xf32>
    %132 = arith.mulf %123, %103 : vector<8x32xf32>
    %133 = arith.mulf %117, %125 : vector<8x32xf32>
    %134 = arith.addf %132, %133 : vector<8x32xf32>
    %135 = math.tanh %134 : vector<8x32xf32>
    %136 = arith.mulf %131, %135 : vector<8x32xf32>
    %c4_i32 = arith.constant 4 : i32
    %c0_38 = arith.constant 0 : index
    %c0_39 = arith.constant 0 : index
    %137 = vector.load %arg10[%c0_38, %c0_39] : memref<8x32xf32, #tpu.memory_space<vmem>>, vector<8x32xf32>
    tpu.vector_store %arg10[%c0_38, %c0_39], %136 {strides = array<i32>} : memref<8x32xf32, #tpu.memory_space<vmem>>, vector<8x32xf32>,
    %c0_40 = arith.constant 0 : index
    %c0_41 = arith.constant 0 : index
    %138 = vector.load %arg11[%c0_40, %c0_41] : memref<8x32xf32, #tpu.memory_space<vmem>>, vector<8x32xf32>
    tpu.vector_store %arg11[%c0_40, %c0_41], %134 {strides = array<i32>} : memref<8x32xf32, #tpu.memory_space<vmem>>, vector<8x32xf32>,
    %c1_i32_42 = arith.constant 1 : i32
    %139 = arith.cmpi eq, %arg0, %c1_i32_42 : i32
    %140 = arith.extui %139 : i1 to i32
    %c0_i32_43 = arith.constant 0 : i32
    %141 = arith.cmpi ne, %140, %c0_i32_43 : i32
    scf.if %141 {
      %cst_44 = arith.constant dense<0.000000e+00> : vector<8xf32>
      %142 = vector.multi_reduction <add>, %136, %cst_44 [1] : vector<8x32xf32> to vector<8xf32>
      %143 = vector.shape_cast %142 : vector<8xf32> to vector<8x1xf32>
      %cst_45 = arith.constant 3.200000e+01 : f32
      %144 = vector.broadcast %cst_45 : f32 to vector<8x1xf32>
      %145 = arith.divf %143, %144 : vector<8x1xf32>
      %146 = vector.broadcast %145 : vector<8x1xf32> to vector<8x32xf32>
      %147 = arith.subf %136, %146 : vector<8x32xf32>
      %148 = arith.mulf %147, %147 : vector<8x32xf32>
      %cst_46 = arith.constant dense<0.000000e+00> : vector<8xf32>
      %149 = vector.multi_reduction <add>, %148, %cst_46 [1] : vector<8x32xf32> to vector<8xf32>
      %150 = vector.shape_cast %149 : vector<8xf32> to vector<8x1xf32>
      %cst_47 = arith.constant 3.200000e+01 : f32
      %151 = vector.broadcast %cst_47 : f32 to vector<8x1xf32>
      %152 = arith.divf %150, %151 : vector<8x1xf32>
      %153 = vector.broadcast %145 : vector<8x1xf32> to vector<8x32xf32>
      %154 = arith.subf %136, %153 : vector<8x32xf32>
      %cst_48 = arith.constant 9.99999974E-6 : f32
      %155 = vector.broadcast %cst_48 : f32 to vector<8x1xf32>
      %156 = arith.addf %152, %155 : vector<8x1xf32>
      %157 = math.rsqrt %156 : vector<8x1xf32>
      %158 = vector.broadcast %157 : vector<8x1xf32> to vector<8x32xf32>
      %159 = arith.mulf %154, %158 : vector<8x32xf32>
      %c0_49 = arith.constant 0 : index
      %c0_50 = arith.constant 0 : index
      %160 = vector.load %arg5[%c0_49, %c0_50] : memref<1x32xf32, #tpu.memory_space<vmem>>, vector<1x32xf32>
      %161 = vector.broadcast %160 : vector<1x32xf32> to vector<8x32xf32>
      %162 = arith.mulf %159, %161 : vector<8x32xf32>
      %c0_51 = arith.constant 0 : index
      %c0_52 = arith.constant 0 : index
      %163 = vector.load %arg6[%c0_51, %c0_52] : memref<1x32xf32, #tpu.memory_space<vmem>>, vector<1x32xf32>
      %164 = vector.broadcast %163 : vector<1x32xf32> to vector<8x32xf32>
      %165 = arith.addf %162, %164 : vector<8x32xf32>
      %c0_53 = arith.constant 0 : index
      %c0_54 = arith.constant 0 : index
      %166 = vector.load %arg7[%c0_53, %c0_54] : memref<32x4xf32, #tpu.memory_space<vmem>>, vector<32x4xf32>
      %cst_55 = arith.constant dense<0.000000e+00> : vector<8x4xf32>
      %167 = tpu.matmul %165, %166, %cst_55 {dimension_numbers = #tpu.dot_dimension_numbers<[1], [0], [0], [1], [0, 0, 1, 1], [], []>, precision = #tpu.contract_precision<fp32>} : vector<8x32xf32>, vector<32x4xf32>, vector<8x4xf32> -> vector<8x4xf32>
      %c0_56 = arith.constant 0 : index
      %c0_57 = arith.constant 0 : index
      %168 = vector.load %arg8[%c0_56, %c0_57] : memref<1x4xf32, #tpu.memory_space<vmem>>, vector<1x4xf32>
      %169 = vector.broadcast %168 : vector<1x4xf32> to vector<8x4xf32>
      %170 = arith.addf %167, %169 : vector<8x4xf32>
      %171 = arith.negf %170 : vector<8x4xf32>
      %172 = math.exp %171 : vector<8x4xf32>
      %cst_58 = arith.constant 1.000000e+00 : f32
      %173 = vector.broadcast %cst_58 : f32 to vector<8x4xf32>
      %174 = arith.addf %173, %172 : vector<8x4xf32>
      %175 = arith.divf %173, %174 : vector<8x4xf32>
      %c0_59 = arith.constant 0 : index
      %c0_60 = arith.constant 0 : index
      %176 = vector.load %arg9[%c0_59, %c0_60] : memref<8x4xf32, #tpu.memory_space<vmem>>, vector<8x4xf32>
      tpu.vector_store %arg9[%c0_59, %c0_60], %175 {strides = array<i32>} : memref<8x4xf32, #tpu.memory_space<vmem>>, vector<8x4xf32>,
    } else {
    }
    return
  }
  func.func @transform_0(%arg0: i32) -> (i32, i32) {
    %c0_i32 = arith.constant 0 : i32
    %c0_i32_0 = arith.constant 0 : i32
    return %arg0, %c0_i32 : i32, i32
  }
  func.func @transform_1(%arg0: i32) -> (i32, i32) {
    %c0_i32 = arith.constant 0 : i32
    %c0_i32_0 = arith.constant 0 : i32
    %c0_i32_1 = arith.constant 0 : i32
    return %c0_i32, %c0_i32_0 : i32, i32
  }
  func.func @transform_2(%arg0: i32) -> (i32, i32) {
    %c0_i32 = arith.constant 0 : i32
    %c0_i32_0 = arith.constant 0 : i32
    %c0_i32_1 = arith.constant 0 : i32
    return %c0_i32, %c0_i32_0 : i32, i32
  }
  func.func @transform_3(%arg0: i32) -> (i32, i32) {
    %c0_i32 = arith.constant 0 : i32
    %c0_i32_0 = arith.constant 0 : i32
    %c0_i32_1 = arith.constant 0 : i32
    return %c0_i32, %c0_i32_0 : i32, i32
  }
  func.func @transform_4(%arg0: i32) -> (i32, i32) {
    %c0_i32 = arith.constant 0 : i32
    %c0_i32_0 = arith.constant 0 : i32
    %c0_i32_1 = arith.constant 0 : i32
    return %c0_i32, %c0_i32_0 : i32, i32
  }
  func.func @transform_5(%arg0: i32) -> (i32, i32) {
    %c0_i32 = arith.constant 0 : i32
    %c0_i32_0 = arith.constant 0 : i32
    %c0_i32_1 = arith.constant 0 : i32
    return %c0_i32, %c0_i32_0 : i32, i32
  }
  func.func @transform_6(%arg0: i32) -> (i32, i32) {
    %c0_i32 = arith.constant 0 : i32
    %c0_i32_0 = arith.constant 0 : i32
    %c0_i32_1 = arith.constant 0 : i32
    return %c0_i32, %c0_i32_0 : i32, i32
  }
  func.func @transform_7(%arg0: i32) -> (i32, i32) {
    %c0_i32 = arith.constant 0 : i32
    %c0_i32_0 = arith.constant 0 : i32
    %c0_i32_1 = arith.constant 0 : i32
    return %c0_i32, %c0_i32_0 : i32, i32
  }
  func.func @transform_8(%arg0: i32) -> (i32, i32) {
    %c0_i32 = arith.constant 0 : i32
    %c0_i32_0 = arith.constant 0 : i32
    %c0_i32_1 = arith.constant 0 : i32
    return %c0_i32, %c0_i32_0 : i32, i32
  }
}

</mosaic_0001>

<bundles_post_ra>
// kernel: lstm_forward.1
= control target key start
LH: loop header
LB: loop body
LE: loop exit
PB: predicated region body
PF: predicated region fallthrough
CT: control target
= control target key end

     0   :  { %s4526_s27 = smov 0   ;;  %s4905_s0 = inlined_call_operand.vmem [shape: f32[64,4], index: 0, kind: input, shape index: {}]   ;;  %s4906_s1 = inlined_call_operand.vmem [shape: f32[4,128], index: 1, kind: input, shape index: {}]   ;;  %s4907_s2 = inlined_call_operand.vmem [shape: f32[32,128], index: 2, kind: input, shape index: {}]   ;;  %s4908_s3 = inlined_call_operand.vmem [shape: f32[1,128], index: 3, kind: input, shape index: {}]   ;;  %s4909_s4 = inlined_call_operand.vmem [shape: f32[1,32], index: 4, kind: input, shape index: {}]   ;;  %s4910_s5 = inlined_call_operand.vmem [shape: f32[1,32], index: 5, kind: input, shape index: {}]   ;;  %s4911_s6 = inlined_call_operand.vmem [shape: f32[32,4], index: 6, kind: input, shape index: {}]   ;;  %s4912_s7 = inlined_call_operand.vmem [shape: f32[1,4], index: 7, kind: input, shape index: {}]   ;;  %s4913_s8 = inlined_call_operand.vmem [shape: f32[8,4], index: 8, kind: output, shape index: {}]  }
   0x1 LB: > { %s4532_s28 = sadd.s32 4294967295, %s4467_s27   ;;  %p3575_p0 = scmp.ge.s32.totalorder %s4467_s27, 1  ;;  %s4467_s27 = sphi %s4526_s27, %s18_s27  }
   0x2   : > { %p258_p1 = scmp.lt.s32.totalorder %s4467_s27, 3 }
   0x4   : > { %p259_p2 = pnand %p3575_p0, %p258_p1 }
   0x5   : > { %s3576_s29 = sshll.u32 (!%p259_p2), %s4532_s28, 2  ;;  %p3578_p4 = scmp.ne.s32.totalorder (!%p259_p2), %s4532_s28, 0 }
   0x6   : > { %262 = sbr.rel (%p259_p2) target bundleno = 3872 (0xf20), region = 52  ;;  %p288_p3 = scmp.lt.s32.totalorder (!%p259_p2), %s3576_s29, 7 }
   0xd   : > { %s4915_s29 = smov (!%p288_p3, %s3576_s29), 7  ;;  %296 = sbr.rel (%p3578_p4) target bundleno = 20 (0x14), region = 56 }
   0xe   : > { %s3577_s30 = sshll.u32 %s4915_s29, 3  ;;  %vm297_vm0 = vcmask (!%p3578_p4), 261120   ;;  %v4469_v0 = vmov (!%p3578_p4), 0.0  }
   0xf   : > { %s291_s11 = scalar_lea.vmem %s4905_s0, %s3577_s30  ;;  %298 = vst.msk [vmem:[#allocation2] sm:$0xff] (!%p3578_p4), %vm297_vm0, %v4469_v0  ;;  %299 = vst.msk [vmem:[#allocation3] sm:$0xff] (!%p3578_p4), %vm297_vm0, %v4469_v0 }
  0x14 PF: > { %v304_v1 = vld [vmem:[%s4906_s1] sm:$0xf]  ;;  %vm325_vm1 = vcmask 1043456   ;;  %vm312_vm2 = vcmask 31744   ;;  %v301_v3 = vld [vmem:[%s291_s11 + $0x8] sm:$0xff]  ;;  %v302_v7 = vld [vmem:[%s291_s11 + $0x10] sm:$0xff] }
  0x15   : > { %v300_v2 = vld [vmem:[%s291_s11] sm:$0xff]  ;;  %v327_v4 = vsel %vm325_vm1, %v304_v1, 0  ;;  %v317_v6 = vsel %vm312_vm2, %v301_v3, 0  ;;  %v303_v8 = vld [vmem:[%s291_s11 + $0x18] sm:$0xff]  ;;  %v320_v12 = vsel %vm312_vm2, %v302_v7, 0  ;;  %v909_v36 = vld [vmem:[%s4907_s2 + $0x8] sm:$0xff] }
  0x16   : > { %v314_v5 = vsel %vm312_vm2, %v300_v2, 0  ;;  %v4546_v9 = vand.u32 4294901760, %v327_v4  ;;  %v4550_v11 = vand.u32 4294901760, %v317_v6  ;;  %v4553_v13 = vand.u32 4294901760, %v320_v12  ;;  %v908_v35 = vld [vmem:[%s4907_s2] sm:$0xff]  ;;  %v910_v42 = vld [vmem:[%s4907_s2 + $0x10] sm:$0xff] }
  0x17   : > { %v4548_v10 = vand.u32 4294901760, %v314_v5  ;;  %v323_v14 = vsel %vm312_vm2, %v303_v8, 0  ;;  %v912_v37 = vld [vmem:[#allocation2] sm:$0xff]  ;;  %vm915_vm3 = vcmask 261120   ;;  %v920_v39 = vand.u32 4294901760, %v908_v35  ;;  %v911_v43 = vld [vmem:[%s4907_s2 + $0x18] sm:$0xff] }
  0x18   : > { %3771 = vmatprep.subr.mxu1 %v4546_v9  ;;  %v437_v16 = vsub.f32 %v327_v4, %v4546_v9  ;;  %v4562_v17 = vsub.f32 %v317_v6, %v4550_v11  ;;  %3795 = vmatprep.subr.mxu0 %v4546_v9  ;;  %v4565_v18 = vand.u32 4294901760, %v323_v14  ;;  %v4570_v19 = vsub.f32 %v320_v12, %v4553_v13  ;;  %s4473_s24 = smov 64   ;;  %s4474_s25 = smov 32  }
  0x19   : > { %v4558_v15 = vsub.f32 %v314_v5, %v4548_v10  ;;  %3772 = vmatpush3.msra.mxu1 %v4546_v9  ;;  %3796 = vmatpush3.msra.mxu0 %v4546_v9  ;;  %v923_v40 = vand.u32 4294901760, %v909_v36  ;;  %v917_v41 = vsel %vm915_vm3, %v912_v37, 0  ;;  %v926_v45 = vand.u32 4294901760, %v910_v42  ;;  %s4475_s26 = smov 96   ;;  %p3584_p5 = scmp.ne.s32.totalorder %s4532_s28, 1 }
  0x1a   : > { %v438_v21 = vand.u32 4294901760, %v437_v16  ;;  %v407_v22 = vand.u32 4294901760, %v4562_v17  ;;  %v4575_v23 = vsub.f32 %v323_v14, %v4565_v18  ;;  %v417_v24 = vand.u32 4294901760, %v4570_v19  ;;  %s4476_s9 = smov (!%p3584_p5), 96   ;;  %s4477_s10 = smov (!%p3584_p5), 32  }
  0x1b   : > { %v397_v20 = vand.u32 4294901760, %v4558_v15  ;;  %v4599_v44 = vand.u32 4294901760, %v917_v41  ;;  %v929_v46 = vand.u32 4294901760, %v911_v43  ;;  %v4603_v47 = vsub.f32 %v908_v35, %v920_v39 }
  0x1c   : > { %v439_v26 = vsub.f32 %v437_v16, %v438_v21  ;;  %v408_v27 = vsub.f32 %v4562_v17, %v407_v22  ;;  %v427_v28 = vand.u32 4294901760, %v4575_v23  ;;  %3803 = vmatprep.subr.mxu0 %v438_v21  ;;  %v418_v29 = vsub.f32 %v4570_v19, %v417_v24 }
  0x1d   : > { %v398_v25 = vsub.f32 %v4558_v15, %v397_v20  ;;  %3797 = vmatprep.mubr.f32.mxu0 %v397_v20  ;;  %v4605_v48 = vsub.f32 %v909_v36, %v923_v40  ;;  %v4470_v49 = vmov 0.0|0.0   ;;  %v4612_v50 = vsub.f32 %v917_v41, %v4599_v44 }
  0x1e   : > { %3798 = vmatmul.mubr.f32.vlgmr.msra.gmra.mrb[0].mxu0 %v407_v22  ;;  %v440_v31 = vand.u32 4294901760, %v439_v26  ;;  %v409_v32 = vand.u32 4294901760, %v408_v27  ;;  %v428_v33 = vsub.f32 %v4575_v23, %v427_v28  ;;  %v419_v34 = vand.u32 4294901760, %v418_v29 }
  0x1f   : > { %v399_v30 = vand.u32 4294901760, %v398_v25  ;;  %3800 = vmatprep.mubr.f32.mxu0 %v417_v24  ;;  %3804 = vmatpush3.msra.mxu0 %v438_v21  ;;  %v1001_v51 = vand.u32 4294901760, %v4603_v47  ;;  %v1008_v52 = vand.u32 4294901760, %v4605_v48  ;;  %v4617_v53 = vsub.f32 %v910_v42, %v926_v45 }
  0x20   : > { %3811 = vmatprep.subr.mxu0 %v4546_v9  ;;  %3779 = vmatprep.subr.mxu1 %v440_v31  ;;  %v429_v38 = vand.u32 4294901760, %v428_v33  ;;  %v4619_v54 = vsub.f32 %v911_v43, %v929_v46  ;;  %v4624_v55 = vpack.c.bf16 %v923_v40, %v920_v39  ;;  %v990_v56 = vand.u32 4294901760, %v4612_v50 }
  0x21   : > { %3773 = vmatprep.mubr.f32.mxu1 %v399_v30  ;;  %v1002_v57 = vsub.f32 %v4603_v47, %v1001_v51  ;;  %v1009_v58 = vsub.f32 %v4605_v48, %v1008_v52  ;;  %v1015_v59 = vand.u32 4294901760, %v4617_v53  ;;  %v4637_v61 = vpack.c.bf16 %v929_v46, %v926_v45 }
  0x22   : > { %3774 = vmatmul.mubr.f32.vlgmr.msra.gmra.mrb[0].mxu1 %v409_v32  ;;  %3801 = vmatmul.mubr.f32.gmra.mrb[2].mxu0 %v427_v28  ;;  %v1022_v60 = vand.u32 4294901760, %v4619_v54  ;;  %v991_v62 = vsub.f32 %v4612_v50, %v990_v56  ;;  %vm4471_vm4 = vmmov 0   ;;  %v4472_v3 = vmov 0.0  }
  0x23   : > { %3780 = vmatpush3.msra.mxu1 %v440_v31  ;;  %3776 = vmatprep.mubr.f32.mxu1 %v419_v34  ;;  %v1003_v63 = vand.u32 4294901760, %v1002_v57  ;;  %v1010_v0 = vand.u32 4294901760, %v1009_v58  ;;  %v1016_v1 = vsub.f32 %v4617_v53, %v1015_v59  ;;  %v913_v34 = vld [vmem:[#allocation3] sm:$0xff]  ;;  %vm4479_vm5 = vmmov (!%p3584_p5), 0  }
  0x24   : > { %3787 = vmatprep.subr.mxu1 %v437_v16  ;;  %3805 = vmatprep.mubr.f32.mxu0 %v4548_v10  ;;  %v1023_v2 = vsub.f32 %v4619_v54, %v1022_v60  ;;  %v992_v4 = vand.u32 4294901760, %v991_v62  ;;  %v4690_v12 = vpack.c.bf16 %v1022_v60, %v1015_v59 }
  0x25   : > { %v4654_v5 = vpack.c.bf16 %v1010_v0, %v1003_v63  ;;  %v1017_v6 = vand.u32 4294901760, %v1016_v1 }
  0x26   : > { %3777 = vmatmul.mubr.f32.gmra.mrb[2].mxu1 %v429_v38  ;;  %3806 = vmatmul.mubr.f32.vlgmr.msra.gmra.mrb[0].mxu0 %v4550_v11  ;;  %v1024_v7 = vand.u32 4294901760, %v1023_v2 }
  0x27   : > { %3781 = vmatprep.mubr.f32.mxu1 %v4548_v10  ;;  %3808 = vmatprep.mubr.f32.mxu0 %v4553_v13 }
  0x28   : > { %3812 = vmatpush3.msra.mxu0 %v4546_v9  ;;  %v4658_v8 = vpack.c.bf16 %v1024_v7, %v1017_v6  ;;  %v4666_v9 = vpack.c.bf16 %v4605_v48, %v4603_v47 }
  0x29   : > { %4185 = vmatprep.subr.bf16.mxu0 %v4470_v49 }
  0x2a   : > { %3782 = vmatmul.mubr.f32.vlgmr.msra.gmra.mrb[0].mxu1 %v4550_v11  ;;  %3809 = vmatmul.mubr.f32.gmra.mrb[2].mxu0 %v4565_v18 }
  0x2b   : > { %3788 = vmatpush3.msra.mxu1 %v437_v16  ;;  %3784 = vmatprep.mubr.f32.mxu1 %v4553_v13 }
  0x2c   : > { %4149 = vmatprep.subr.bf16.mxu1 %v4470_v49  ;;  %3813 = vmatprep.mubr.f32.mxu0 %v4548_v10  ;;  %v4673_v10 = vpack.c.bf16 %v4619_v54, %v4617_v53 }
  0x2e   : > { %3785 = vmatmul.mubr.f32.gmra.mrb[2].mxu1 %v4565_v18  ;;  %3814 = vmatmul.mubr.f32.vlgmr.msra.gmra.mrb[0].mxu0 %v4550_v11  ;;  %v4686_v11 = vpack.c.bf16 %v1008_v52, %v1001_v51 }
  0x2f   : > { %3789 = vmatprep.mubr.f32.mxu1 %v4558_v15  ;;  %3816 = vmatprep.mubr.f32.mxu0 %v4553_v13  ;;  %v3579_v15 = vld [vmem:[%s4908_s3] ss:$0 sm:$0xff] }
  0x30   : > { %4187 = vmatpush3.bf16.msra.mxu0 %v4624_v55 }
  0x31   : > { %4188 = vmatprep.subr.bf16.mxu0 %v4470_v49 }
  0x32   : > { %3790 = vmatmul.mubr.f32.vlgmr.msra.gmra.mrb[0].mxu1 %v4562_v17  ;;  %3817 = vmatmul.mubr.f32.gmra.mrb[2].mxu0 %v4565_v18 }
  0x33   : > { %4151 = vmatpush3.bf16.msra.mxu1 %v4624_v55  ;;  %3792 = vmatprep.mubr.f32.mxu1 %v4570_v19 }
  0x34   : > { %4152 = vmatprep.subr.bf16.mxu1 %v4470_v49  ;;  %4190 = vmatpush3.bf16.msra.mxu0 %v4637_v61 }
  0x35   : > { %3893 = vmatprep.mubr.msk.f32.mxu0 %vm4471_vm4, %v4472_v3  ;;  %4191 = vmatprep.subr.bf16.mxu0 %v4470_v49 }
  0x36   : > { %3793 = vmatmul.mubr.f32.gmra.mrb[2].mxu1 %v4575_v23 }
  0x37   : > { %4154 = vmatpush3.bf16.msra.mxu1 %v4637_v61  ;;  %3827 = vmatprep.mubr.msk.f32.mxu1 %vm4471_vm4, %v4472_v3 }
  0x38   : > { %4155 = vmatprep.subr.bf16.mxu1 %v4470_v49 }
  0x3a   : > { %3828 = vmatmul.mubr.f32.vlgmr.msra.gmra.mrb[4].mxu1 %v992_v4 }
  0x3b   : > { %4157 = vmatpush3.bf16.msra.mxu1 %v4654_v5  ;;  %3838 = vmatprep.mubr.msk.f32.mxu1 %vm4471_vm4, %v4472_v3 }
  0x3c   : > { %4158 = vmatprep.subr.bf16.mxu1 %v4470_v49 }
  0x3f   : > { %4160 = vmatpush3.bf16.msra.mxu1 %v4658_v8 }
  0x40   : > { %4161 = vmatprep.subr.bf16.mxu1 %v4470_v49 }
  0x42   : > { %3839 = vmatmul.mubr.f32.vlgmr.msra.gmra.mrb[4].mxu1 %v4599_v44 }
  0x43   : > { %4163 = vmatpush3.bf16.msra.mxu1 %v4666_v9  ;;  %3849 = vmatprep.mubr.msk.f32.mxu1 %vm4471_vm4, %v4472_v3 }
  0x44   : > { %4164 = vmatprep.subr.bf16.mxu1 %v4470_v49 }
  0x47   : > { %4166 = vmatpush3.bf16.msra.mxu1 %v4673_v10 }
  0x48   : > { %4167 = vmatprep.subr.bf16.mxu1 %v4470_v49 }
  0x4a   : > { %3850 = vmatmul.mubr.f32.vlgmr.msra.gmra.mrb[4].mxu1 %v4612_v50 }
  0x4b   : > { %4169 = vmatpush3.bf16.msra.mxu1 %v4624_v55  ;;  %3860 = vmatprep.mubr.msk.f32.mxu1 %vm4471_vm4, %v4472_v3 }
  0x4c   : > { %4170 = vmatprep.subr.bf16.mxu1 %v4470_v49 }
  0x4f   : > { %4172 = vmatpush3.bf16.msra.mxu1 %v4637_v61 }
  0x50   : > { %4173 = vmatprep.subr.bf16.mxu1 %v4470_v49 }
  0x52   : > { %3861 = vmatmul.mubr.f32.vlgmr.msra.gmra.mrb[4].mxu1 %v990_v56 }
  0x53   : > { %4175 = vmatpush3.bf16.msra.mxu1 %v4686_v11  ;;  %3871 = vmatprep.mubr.msk.f32.mxu1 %vm4471_vm4, %v4472_v3 }
  0x54   : > { %4176 = vmatprep.subr.bf16.mxu1 %v4470_v49 }
  0x57   : > { %4178 = vmatpush3.bf16.msra.mxu1 %v4690_v12 }
  0x58   : > { %4179 = vmatprep.subr.bf16.mxu1 %v4470_v49 }
  0x5a   : > { %3872 = vmatmul.mubr.f32.vlgmr.msra.gmra.mrb[4].mxu1 %v4599_v44 }
  0x5b   : > { %4181 = vmatpush3.bf16.msra.mxu1 %v4624_v55  ;;  %3882 = vmatprep.mubr.msk.f32.mxu1 %vm4471_vm4, %v4472_v3 }
  0x5c   : > { %4182 = vmatprep.subr.bf16.mxu1 %v4470_v49 }
  0x5f   : > { %4184 = vmatpush3.bf16.msra.mxu1 %v4637_v61 }
  0x60   : > { %4221 = vmatprep.subr.bf16.mxu1 %v4470_v49 }
  0x62   : > { %3883 = vmatmul.mubr.f32.vlgmr.msra.gmra.mrb[4].mxu1 %v4599_v44 }
  0x63   : > { %4223 = vmatpush3.bf16.msra.mxu1 %v4624_v55  ;;  %3959 = vmatprep.mubr.msk.f32.mxu1 %vm4471_vm4, %v4472_v3 }
  0x64   : > { %4224 = vmatprep.subr.bf16.mxu1 %v4470_v49 }
  0x67   : > { %4226 = vmatpush3.bf16.msra.mxu1 %v4637_v61 }
  0x68   : > { %4227 = vmatprep.subr.bf16.mxu1 %v4470_v49 }
 0x101   : > { %v3815_v13 = vpop.f32.mrb[0].mxu0 }
 0x102   : > { %v882_v14 = vpop.f32.mrb[1].mxu0 }
 0x105   : > { %v3791_v16 = vpop.f32.mrb[0].mxu1  ;;  %v3818_v17 = vpop.f32.mrb[2].mxu0 }
 0x106   : > { %v4329_v18 = vadd.f32 %v3791_v16, %v3579_v15  ;;  %v599_v19 = vpop.f32.mrb[1].mxu1  ;;  %v894_v20 = vpop.f32.mrb[3].mxu0 }
 0x107   : > { %v4331_v21 = vadd.f32 %v3579_v15, %v599_v19 }
 0x108   : > { %v4714_v22 = vadd.f32 %v4329_v18, %v3815_v13 }
 0x109   : > { %v4332_v23 = vadd.f32 %v4331_v21, %v882_v14  ;;  %v3794_v24 = vpop.f32.mrb[2].mxu1 }
 0x10a   : > { %v4333_v25 = vadd.f32 %v3794_v24, %v3579_v15  ;;  %v613_v26 = vpop.f32.mrb[3].mxu1 }
 0x10b   : > { %v4335_v27 = vadd.f32 %v3579_v15, %v613_v26 }
 0x10c   : > { %v4716_v28 = vadd.f32 %v4333_v25, %v3818_v17 }
 0x10d   : > { %v4718_v29 = vadd.f32 %v4335_v27, %v894_v20 }
 0x135   : > { %v1400_v30 = vpop.f32.mrb[4].mxu1 }
 0x136   : > { %v1404_v31 = vadd.f32 %v4332_v23, %v1400_v30  ;;  %v3884_v32 = vpop.f32.mrb[5].mxu1 }
 0x138   : > { %4423 = vtanh.f32 %v1404_v31  ;;  %v3580_v35 = vmul.f32 -1.442695, %v1404_v31 }
 0x13a   : > { %4425 = vpow2.f32 %v3580_v35 }
 0x142   : > { %v4424_v33 = vpop.eup %4423 }
 0x143   : > { %1418 = vrot.lane.b32.xlu0 %v4424_v33, %s4473_s24 }
 0x144   : > { %v4426_v36 = vpop.eup %4425 }
 0x145   : > { %v1408_v37 = vadd.f32 1.0, %v4426_v36 }
 0x147   : > { %1413 = vrot.lane.b32.xlu0 %v913_v34, %s4474_s25  ;;  %4427 = vrcp.f32 %v1408_v37 }
 0x151   : > { %v4428_v38 = vpop.eup %4427 }
 0x1b5   : > { %v1419_v39 = vpop.permute.xlu0 %1418 }
 0x1b6   : > { %v1421_v40 = vmul.f32 %v4428_v38, %v1419_v39 }
 0x1b8   : > { %1423 = vrot.lane.b32.xlu1 %v1421_v40, %s4474_s25 }
 0x1b9   : > { %v1414_v41 = vpop.permute.xlu0 %1413 }
 0x1ba   : > { %v1416_v42 = vmul.f32 %v4428_v38, %v1414_v41 }
 0x22a   : > { %v1424_v43 = vpop.permute.xlu1 %1423 }
 0x22b   : > { %v4723_v44 = vadd.f32 %v1424_v43, %v1416_v42 }
 0x22d   : > { %4429 = vtanh.f32 %v4723_v44 }
 0x237   : > { %v4430_v45 = vpop.eup %4429 }
 0x238   : > { %1429 = vrot.lane.b32.xlu1 %v4430_v45, %s4473_s24 }
 0x2aa   : > { %v1430_v46 = vpop.permute.xlu1 %1429 }
 0x2ab   : > { %v1432_v47 = vmul.f32 %v4428_v38, %v1430_v46 }
 0x2ad   : > { %1436 = vrot.lane.b32.xlu0 %v1432_v47, %s4474_s25 }
 0x31f   : > { %v1437_v48 = vpop.permute.xlu0 %1436 }
 0x320   : > { %v1438_v50 = vsel %vm915_vm3, %v1437_v48, 0 }
 0x321   : > { %v1509_v51 = vand.u32 4294901760, %v1438_v50 }
 0x323   : > { %v1510_v52 = vsub.f32 %v1438_v50, %v1509_v51 }
 0x325   : > { %v1511_v53 = vand.u32 4294901760, %v1510_v52 }
 0x327   : > { %v1512_v54 = vsub.f32 %v1510_v52, %v1511_v53 }
 0x329   : > { %v1513_v56 = vand.u32 4294901760, %v1512_v54 }
 0x32b   : > { %3894 = vmatmul.mubr.f32.vlgmr.msra.gmra.mrb[4].mxu0 %v1513_v56 }
 0x32c   : > { %4193 = vmatpush3.bf16.msra.mxu0 %v4654_v5  ;;  %3904 = vmatprep.mubr.msk.f32.mxu0 %vm4471_vm4, %v4472_v3 }
 0x32d   : > { %4194 = vmatprep.subr.bf16.mxu0 %v4470_v49 }
 0x330   : > { %4196 = vmatpush3.bf16.msra.mxu0 %v4658_v8 }
 0x331   : > { %4197 = vmatprep.subr.bf16.mxu0 %v4470_v49 }
 0x333   : > { %3905 = vmatmul.mubr.f32.vlgmr.msra.gmra.mrb[4].mxu0 %v1509_v51 }
 0x334   : > { %4199 = vmatpush3.bf16.msra.mxu0 %v4666_v9  ;;  %3915 = vmatprep.mubr.msk.f32.mxu0 %vm4471_vm4, %v4472_v3 }
 0x335   : > { %4200 = vmatprep.subr.bf16.mxu0 %v4470_v49 }
 0x338   : > { %4202 = vmatpush3.bf16.msra.mxu0 %v4673_v10 }
 0x339   : > { %4203 = vmatprep.subr.bf16.mxu0 %v4470_v49 }
 0x33b   : > { %3916 = vmatmul.mubr.f32.vlgmr.msra.gmra.mrb[4].mxu0 %v1510_v52 }
 0x33c   : > { %4205 = vmatpush3.bf16.msra.mxu0 %v4624_v55  ;;  %3926 = vmatprep.mubr.msk.f32.mxu0 %vm4471_vm4, %v4472_v3 }
 0x33d   : > { %4206 = vmatprep.subr.bf16.mxu0 %v4470_v49 }
 0x340   : > { %4208 = vmatpush3.bf16.msra.mxu0 %v4637_v61 }
 0x341   : > { %4209 = vmatprep.subr.bf16.mxu0 %v4470_v49 }
 0x343   : > { %3927 = vmatmul.mubr.f32.vlgmr.msra.gmra.mrb[4].mxu0 %v1511_v53 }
 0x344   : > { %4211 = vmatpush3.bf16.msra.mxu0 %v4686_v11  ;;  %3937 = vmatprep.mubr.msk.f32.mxu0 %vm4471_vm4, %v4472_v3 }
 0x345   : > { %4212 = vmatprep.subr.bf16.mxu0 %v4470_v49 }
 0x348   : > { %4214 = vmatpush3.bf16.msra.mxu0 %v4690_v12 }
 0x349   : > { %4215 = vmatprep.subr.bf16.mxu0 %v4470_v49 }
 0x34b   : > { %3938 = vmatmul.mubr.f32.vlgmr.msra.gmra.mrb[4].mxu0 %v1509_v51 }
 0x34c   : > { %4217 = vmatpush3.bf16.msra.mxu0 %v4624_v55  ;;  %3948 = vmatprep.mubr.msk.f32.mxu0 %vm4471_vm4, %v4472_v3 }
 0x34d   : > { %4218 = vmatprep.subr.bf16.mxu0 %v4470_v49 }
 0x350   : > { %4220 = vmatpush3.bf16.msra.mxu0 %v4637_v61 }
 0x351   : > { %4257 = vmatprep.subr.bf16.mxu0 %v4470_v49 }
 0x353   : > { %3949 = vmatmul.mubr.f32.vlgmr.msra.gmra.mrb[4].mxu0 %v1509_v51 }
 0x354   : > { %4259 = vmatpush3.bf16.msra.mxu0 %v4624_v55  ;;  %4025 = vmatprep.mubr.msk.f32.mxu0 %vm4471_vm4, %v4472_v3 }
 0x355   : > { %4260 = vmatprep.subr.bf16.mxu0 %v4470_v49 }
 0x358   : > { %4262 = vmatpush3.bf16.msra.mxu0 %v4637_v61 }
 0x359   : > { %4263 = vmatprep.subr.bf16.mxu0 %v4470_v49 }
 0x426   : > { %v1921_v57 = vpop.f32.mrb[4].mxu0 }
 0x427   : > { %v1925_v58 = vadd.f32 %v4714_v22, %v1921_v57  ;;  %v3950_v59 = vpop.f32.mrb[5].mxu0 }
 0x429   : > { %4431 = vtanh.f32 %v1925_v58  ;;  %v3581_v62 = vmul.f32 -1.442695, %v1925_v58  ;;  %v3585_v58 = vld [vmem:[%s4909_s4] ss:$0 sm:$0xff] (!%p3584_p5) }
 0x42b   : > { %4433 = vpow2.f32 %v3581_v62 }
 0x433   : > { %v4432_v60 = vpop.eup %4431 }
 0x434   : > { %1935 = vrot.lane.b32.xlu1 %v4432_v60, %s4473_s24 }
 0x435   : > { %v4434_v63 = vpop.eup %4433 }
 0x436   : > { %v1929_v0 = vadd.f32 1.0, %v4434_v63 }
 0x438   : > { %4435 = vrcp.f32 %v1929_v0 }
 0x442   : > { %v4436_v1 = vpop.eup %4435 }
 0x443   : > { %v1933_v6 = vmul.f32 %v4436_v1, %v4723_v44 }
 0x4a6   : > { %v1936_v2 = vpop.permute.xlu1 %1935 }
 0x4a7   : > { %v1938_v4 = vmul.f32 %v4436_v1, %v1936_v2  ;;  %v3586_v2 = vld [vmem:[%s4910_s5] ss:$0 sm:$0xff] (!%p3584_p5) }
 0x4a9   : > { %1940 = vrot.lane.b32.xlu0 %v1938_v4, %s4474_s25  ;;  %v4478_v4 = vmov (!%p3584_p5), 0.0|0.0  }
 0x51b   : > { %v1941_v7 = vpop.permute.xlu0 %1940 }
 0x51c   : > { %v1943_v13 = vadd.f32 %v1941_v7, %v1933_v6 }
 0x51e   : > { %4437 = vtanh.f32 %v1943_v13 }
 0x528   : > { %v4438_v14 = vpop.eup %4437 }
 0x529   : > { %1946 = vrot.lane.b32.xlu1 %v4438_v14, %s4473_s24 }
 0x59b   : > { %v1947_v15 = vpop.permute.xlu1 %1946 }
 0x59c   : > { %v1949_v16 = vmul.f32 %v4436_v1, %v1947_v15  ;;  %v3036_v15 = vld [vmem:[%s4911_s6] sm:$0xff] (!%p3584_p5) }
 0x59e   : > { %1953 = vrot.lane.b32.xlu0 %v1949_v16, %s4474_s25  ;;  %v3037_v16 = vld [vmem:[%s4911_s6 + $0x8] sm:$0xff] (!%p3584_p5) }
 0x610   : > { %v1954_v17 = vpop.permute.xlu0 %1953 }
 0x611   : > { %v1955_v18 = vsel %vm915_vm3, %v1954_v17, 0  ;;  %v3053_v17 = vand.u32 (!%p3584_p5), 4294901760, %v3036_v15 }
 0x612   : > { %v2026_v19 = vand.u32 4294901760, %v1955_v18 }
 0x614   : > { %v2027_v20 = vsub.f32 %v1955_v18, %v2026_v19  ;;  %v3056_v18 = vand.u32 (!%p3584_p5), 4294901760, %v3037_v16 }
 0x616   : > { %v2028_v21 = vand.u32 4294901760, %v2027_v20 }
 0x618   : > { %v2029_v22 = vsub.f32 %v2027_v20, %v2028_v21 }
 0x61a   : > { %v2030_v23 = vand.u32 4294901760, %v2029_v22 }
 0x61c   : > { %3960 = vmatmul.mubr.f32.vlgmr.msra.gmra.mrb[6].mxu1 %v2030_v23 }
 0x61d   : > { %4229 = vmatpush3.bf16.msra.mxu1 %v4654_v5  ;;  %3970 = vmatprep.mubr.msk.f32.mxu1 %vm4471_vm4, %v4472_v3 }
 0x61e   : > { %4230 = vmatprep.subr.bf16.mxu1 %v4470_v49 }
 0x621   : > { %4232 = vmatpush3.bf16.msra.mxu1 %v4658_v8 }
 0x622   : > { %4233 = vmatprep.subr.bf16.mxu1 %v4470_v49 }
 0x624   : > { %3971 = vmatmul.mubr.f32.vlgmr.msra.gmra.mrb[6].mxu1 %v2026_v19 }
 0x625   : > { %4235 = vmatpush3.bf16.msra.mxu1 %v4666_v9  ;;  %3981 = vmatprep.mubr.msk.f32.mxu1 %vm4471_vm4, %v4472_v3 }
 0x626   : > { %4236 = vmatprep.subr.bf16.mxu1 %v4470_v49 }
 0x629   : > { %4238 = vmatpush3.bf16.msra.mxu1 %v4673_v10 }
 0x62a   : > { %4239 = vmatprep.subr.bf16.mxu1 %v4470_v49 }
 0x62c   : > { %3982 = vmatmul.mubr.f32.vlgmr.msra.gmra.mrb[6].mxu1 %v2027_v20  ;;  %v3038_v20 = vld [vmem:[%s4911_s6 + $0x10] sm:$0xff] (!%p3584_p5) }
 0x62d   : > { %4241 = vmatpush3.bf16.msra.mxu1 %v4624_v55  ;;  %3992 = vmatprep.mubr.msk.f32.mxu1 %vm4471_vm4, %v4472_v3  ;;  %v3059_v22 = vand.u32 (!%p3584_p5), 4294901760, %v3038_v20 }
 0x62e   : > { %4242 = vmatprep.subr.bf16.mxu1 %v4470_v49 }
 0x631   : > { %4244 = vmatpush3.bf16.msra.mxu1 %v4637_v61 }
 0x632   : > { %4245 = vmatprep.subr.bf16.mxu1 %v4470_v49 }
 0x634   : > { %3993 = vmatmul.mubr.f32.vlgmr.msra.gmra.mrb[6].mxu1 %v2028_v21  ;;  %v3039_v21 = vld [vmem:[%s4911_s6 + $0x18] sm:$0xff] (!%p3584_p5) }
 0x635   : > { %4247 = vmatpush3.bf16.msra.mxu1 %v4686_v11  ;;  %4003 = vmatprep.mubr.msk.f32.mxu1 %vm4471_vm4, %v4472_v3  ;;  %v3062_v23 = vand.u32 (!%p3584_p5), 4294901760, %v3039_v21 }
 0x636   : > { %4248 = vmatprep.subr.bf16.mxu1 %v4470_v49 }
 0x639   : > { %4250 = vmatpush3.bf16.msra.mxu1 %v4690_v12 }
 0x63a   : > { %4251 = vmatprep.subr.bf16.mxu1 %v4470_v49 }
 0x63c   : > { %4004 = vmatmul.mubr.f32.vlgmr.msra.gmra.mrb[6].mxu1 %v2026_v19 }
 0x63d   : > { %4253 = vmatpush3.bf16.msra.mxu1 %v4624_v55  ;;  %4014 = vmatprep.mubr.msk.f32.mxu1 %vm4471_vm4, %v4472_v3 }
 0x63e   : > { %4254 = vmatprep.subr.bf16.mxu1 %v4470_v49 }
 0x641   : > { %4256 = vmatpush3.bf16.msra.mxu1 %v4637_v61 }
 0x642   : > { %4293 = vmatprep.subr.bf16.mxu1 (!%p3584_p5), %v4478_v4 }
 0x644   : > { %4015 = vmatmul.mubr.f32.vlgmr.msra.gmra.mrb[6].mxu1 %v2026_v19  ;;  %v4861_v19 = vpack.c.bf16 (!%p3584_p5), %v3056_v18, %v3053_v17 }
 0x646   : > { %4295 = vmatpush3.bf16.msra.mxu1 (!%p3584_p5), %v4861_v19 }
 0x647   : > { %4296 = vmatprep.subr.bf16.mxu1 (!%p3584_p5), %v4478_v4 }
 0x717   : > { %v2438_v24 = vpop.f32.mrb[6].mxu1 }
 0x718   : > { %v2442_v25 = vadd.f32 %v4718_v29, %v2438_v24  ;;  %v4016_v26 = vpop.f32.mrb[7].mxu1  ;;  %v3133_v24 = vsub.f32 (!%p3584_p5), %v3036_v15, %v3053_v17 }
 0x719   : > { %v4297_v26 = vpack.c.bf16 (!%p3584_p5), %v3062_v23, %v3059_v22 }
 0x71a   : > { %4439 = vtanh.f32 %v2442_v25  ;;  %v3582_v30 = vmul.f32 -1.442695, %v2442_v25  ;;  %v3140_v25 = vsub.f32 (!%p3584_p5), %v3037_v16, %v3056_v18 }
 0x71b   : > { %4298 = vmatpush3.bf16.msra.mxu1 (!%p3584_p5), %v4297_v26 }
 0x71c   : > { %4441 = vpow2.f32 %v3582_v30  ;;  %v3154_v30 = vsub.f32 (!%p3584_p5), %v3039_v21, %v3062_v23  ;;  %4299 = vmatprep.subr.bf16.mxu1 (!%p3584_p5), %v4478_v4 }
 0x724   : > { %v4440_v27 = vpop.eup %4439 }
 0x725   : > { %2452 = vrot.lane.b32.xlu1 %v4440_v27, %s4473_s24  ;;  %v4873_v27 = vsub.f32 (!%p3584_p5), %v3038_v20, %v3059_v22 }
 0x726   : > { %v4442_v31 = vpop.eup %4441 }
 0x727   : > { %v2446_v32 = vadd.f32 1.0, %v4442_v31  ;;  %v4480_v31 = vmov (!%p3584_p5), 0.0  }
 0x728   : > { %4091 = vmatprep.mubr.msk.f32.mxu1 (!%p3584_p5), %vm4479_vm5, %v4480_v31 }
 0x729   : > { %4443 = vrcp.f32 %v2446_v32  ;;  %v3134_v32 = vand.u32 (!%p3584_p5), 4294901760, %v3133_v24 }
 0x733   : > { %v4444_v33 = vpop.eup %4443 }
 0x734   : > { %v2450_v36 = vmul.f32 %v4444_v33, %v1943_v13 }
 0x797   : > { %v2453_v34 = vpop.permute.xlu1 %2452 }
 0x798   : > { %v2455_v35 = vmul.f32 %v4444_v33, %v2453_v34 }
 0x79a   : > { %2457 = vrot.lane.b32.xlu0 %v2455_v35, %s4474_s25 }
 0x80c   : > { %v2458_v37 = vpop.permute.xlu0 %2457 }
 0x80d   : > { %v2460_v38 = vadd.f32 %v2458_v37, %v2450_v36  ;;  %v3135_v36 = vsub.f32 (!%p3584_p5), %v3133_v24, %v3134_v32 }
 0x80f   : > { %4445 = vtanh.f32 %v2460_v38 }
 0x819   : > { %v4446_v29 = vpop.eup %4445 }
 0x81a   : > { %2463 = vrot.lane.b32.xlu1 %v4446_v29, %s4473_s24 }
 0x88c   : > { %v2464_v39 = vpop.permute.xlu1 %2463 }
 0x88d   : > { %v2466_v40 = vmul.f32 %v4444_v33, %v2464_v39  ;;  %v3141_v33 = vand.u32 (!%p3584_p5), 4294901760, %v3140_v25  ;;  %v3136_v39 = vand.u32 (!%p3584_p5), 4294901760, %v3135_v36 }
 0x88f   : > { %2470 = vrot.lane.b32.xlu0 %v2466_v40, %s4474_s25  ;;  %v4318_v35 = vpack.c.bf16 (!%p3584_p5), %v3141_v33, %v3134_v32  ;;  %v3142_v37 = vsub.f32 (!%p3584_p5), %v3140_v25, %v3141_v33 }
 0x891   : > { %v3143_v40 = vand.u32 (!%p3584_p5), 4294901760, %v3142_v37 }
 0x901   : > { %v2471_v41 = vpop.permute.xlu0 %2470 }
 0x902   : > { %v2472_v42 = vsel %vm915_vm3, %v2471_v41, 0  ;;  %v3148_v41 = vand.u32 (!%p3584_p5), 4294901760, %v4873_v27 }
 0x903   : > { %v2543_v43 = vand.u32 4294901760, %v2472_v42 }
 0x905   : > { %v2544_v44 = vsub.f32 %v2472_v42, %v2543_v43  ;;  %v3155_v42 = vand.u32 (!%p3584_p5), 4294901760, %v3154_v30 }
 0x907   : > { %v2545_v45 = vand.u32 4294901760, %v2544_v44 }
 0x909   : > { %v2546_v46 = vsub.f32 %v2544_v44, %v2545_v45 }
 0x90b   : > { %v2547_v47 = vand.u32 4294901760, %v2546_v46  ;;  %v3149_v46 = vsub.f32 (!%p3584_p5), %v4873_v27, %v3148_v41 }
 0x90d   : > { %4026 = vmatmul.mubr.f32.vlgmr.msra.gmra.mrb[6].mxu0 %v2547_v47  ;;  %v3156_v47 = vsub.f32 (!%p3584_p5), %v3154_v30, %v3155_v42 }
 0x90e   : > { %4265 = vmatpush3.bf16.msra.mxu0 %v4654_v5  ;;  %4036 = vmatprep.mubr.msk.f32.mxu0 %vm4471_vm4, %v4472_v3 }
 0x90f   : > { %4266 = vmatprep.subr.bf16.mxu0 %v4470_v49 }
 0x912   : > { %4268 = vmatpush3.bf16.msra.mxu0 %v4658_v8 }
 0x913   : > { %4269 = vmatprep.subr.bf16.mxu0 %v4470_v49 }
 0x915   : > { %4037 = vmatmul.mubr.f32.vlgmr.msra.gmra.mrb[6].mxu0 %v2543_v43 }
 0x916   : > { %4271 = vmatpush3.bf16.msra.mxu0 %v4666_v9  ;;  %4047 = vmatprep.mubr.msk.f32.mxu0 %vm4471_vm4, %v4472_v3 }
 0x917   : > { %4272 = vmatprep.subr.bf16.mxu0 %v4470_v49 }
 0x91a   : > { %4274 = vmatpush3.bf16.msra.mxu0 %v4673_v10 }
 0x91b   : > { %4275 = vmatprep.subr.bf16.mxu0 %v4470_v49 }
 0x91d   : > { %4048 = vmatmul.mubr.f32.vlgmr.msra.gmra.mrb[6].mxu0 %v2544_v44  ;;  %v4300_v44 = vpack.c.bf16 (!%p3584_p5), %v3143_v40, %v3136_v39 }
 0x91e   : > { %4277 = vmatpush3.bf16.msra.mxu0 %v4624_v55  ;;  %4058 = vmatprep.mubr.msk.f32.mxu0 %vm4471_vm4, %v4472_v3 }
 0x91f   : > { %4278 = vmatprep.subr.bf16.mxu0 %v4470_v49 }
 0x922   : > { %4280 = vmatpush3.bf16.msra.mxu0 %v4637_v61 }
 0x923   : > { %4281 = vmatprep.subr.bf16.mxu0 %v4470_v49 }
 0x925   : > { %4059 = vmatmul.mubr.f32.vlgmr.msra.gmra.mrb[6].mxu0 %v2545_v45  ;;  %v4321_v45 = vpack.c.bf16 (!%p3584_p5), %v3155_v42, %v3148_v41 }
 0x926   : > { %4283 = vmatpush3.bf16.msra.mxu0 %v4686_v11  ;;  %4069 = vmatprep.mubr.msk.f32.mxu0 %vm4471_vm4, %v4472_v3 }
 0x927   : > { %4284 = vmatprep.subr.bf16.mxu0 %v4470_v49 }
 0x92a   : > { %4286 = vmatpush3.bf16.msra.mxu0 %v4690_v12 }
 0x92b   : > { %4287 = vmatprep.subr.bf16.mxu0 %v4470_v49 }
 0x92d   : > { %4070 = vmatmul.mubr.f32.vlgmr.msra.gmra.mrb[6].mxu0 %v2543_v43 }
 0x92e   : > { %4289 = vmatpush3.bf16.msra.mxu0 %v4624_v55  ;;  %4080 = vmatprep.mubr.msk.f32.mxu0 %vm4471_vm4, %v4472_v3 }
 0x92f   : > { %4290 = vmatprep.subr.bf16.mxu0 %v4470_v49 }
 0x932   : > { %4292 = vmatpush3.bf16.msra.mxu0 %v4637_v61 }
 0x933   : > { %4311 = vmatprep.subr.bf16.mxu0 (!%p3584_p5), %v4478_v4 }
 0x935   : > { %4081 = vmatmul.mubr.f32.vlgmr.msra.gmra.mrb[6].mxu0 %v2543_v43 }
 0x936   : > { %4313 = vmatpush3.bf16.msra.mxu0 (!%p3584_p5), %v4861_v19  ;;  %4124 = vmatprep.mubr.msk.f32.mxu0 (!%p3584_p5), %vm4479_vm5, %v4480_v31 }
 0x937   : > { %4314 = vmatprep.subr.bf16.mxu0 (!%p3584_p5), %v4478_v4 }
 0x93a   : > { %4316 = vmatpush3.bf16.msra.mxu0 (!%p3584_p5), %v4297_v26 }
 0x93b   : > { %4317 = vmatprep.subr.bf16.mxu0 (!%p3584_p5), %v4478_v4 }
 0xa08   : > { %v2955_v5 = vpop.f32.mrb[6].mxu0 }
 0xa09   : > { %v2959_v8 = vadd.f32 %v4716_v28, %v2955_v5  ;;  %v4082_v9 = vpop.f32.mrb[7].mxu0 }
 0xa0a   : > { %v3157_v9 = vand.u32 (!%p3584_p5), 4294901760, %v3156_v47 }
 0xa0b   : > { %4447 = vtanh.f32 %v2959_v8  ;;  %v3583_v11 = vmul.f32 -1.442695, %v2959_v8  ;;  %v3150_v8 = vand.u32 (!%p3584_p5), 4294901760, %v3149_v46 }
 0xa0d   : > { %4449 = vpow2.f32 %v3583_v11  ;;  %v4306_v11 = vpack.c.bf16 (!%p3584_p5), %v3140_v25, %v3133_v24 }
 0xa15   : > { %v4448_v10 = vpop.eup %4447 }
 0xa16   : > { %2969 = vrot.lane.b32.xlu1 %v4448_v10, %s4473_s24  ;;  %v4303_v10 = vpack.c.bf16 (!%p3584_p5), %v3157_v9, %v3150_v8 }
 0xa17   : > { %v4450_v12 = vpop.eup %4449 }
 0xa18   : > { %v2963_v55 = vadd.f32 1.0, %v4450_v12  ;;  %v4309_v12 = vpack.c.bf16 (!%p3584_p5), %v3154_v30, %v4873_v27 }
 0xa1a   : > { %4451 = vrcp.f32 %v2963_v55 }
 0xa24   : > { %v4452_v48 = vpop.eup %4451 }
 0xa25   : > { %v2967_v49 = vmul.f32 %v4452_v48, %v2460_v38 }
 0xa88   : > { %v2970_v3 = vpop.permute.xlu1 %2969 }
 0xa89   : > { %v2972_v50 = vmul.f32 %v4452_v48, %v2970_v3 }
 0xa8b   : > { %2974 = vrot.lane.b32.xlu0 %v2972_v50, %s4474_s25 }
 0xafd   : > { %v2975_v61 = vpop.permute.xlu0 %2974 }
 0xafe   : > { %v2977_v51 = vadd.f32 %v2975_v61, %v2967_v49 }
 0xb00   : > { %4453 = vtanh.f32 %v2977_v51 }
 0xb0a   : > { %v4454_v28 = vpop.eup %4453 }
 0xb0b   : > { %2980 = vrot.lane.b32.xlu1 %v4454_v28, %s4473_s24 }
 0xb0f   : > { %2990 = vrot.lane.b32.xlu1 %v2977_v51, %s4475_s26 }
 0xb13   : > { %3022 = vrot.lane.b32.xlu1 (!%p3584_p5), %v3585_v58, %s4476_s9 }
 0xb7d   : > { %v2981_v52 = vpop.permute.xlu1 %2980 }
 0xb7e   : > { %v2983_v53 = vmul.f32 %v4452_v48, %v2981_v52 }
 0xb80   : > { %2985 = vrot.lane.b32.xlu0 %v2983_v53, %s4474_s25 }
 0xb81   : > { %v2991_v54 = vpop.permute.xlu1 %2990 }
 0xb82   : > { %2993 = vst.msk [vmem:[#allocation3] sm:$0xff] %vm915_vm3, %v2991_v54 }
 0xb85   : > { %v3023_v6 = vpop.permute.xlu1 (!%p3584_p5), %3022 }
 0xbed   : > { %2997 = sbr.rel (%p3584_p5) target bundleno = 3872 (0xf20), region = 60 }
 0xbf2   : > { %v2986_v56 = vpop.permute.xlu0 %2985 }
 0xbf3   : > { %2988 = vst.msk [vmem:[#allocation2] sm:$0xff] %vm915_vm3, %v2986_v56  ;;  %v2998_v57 = vsel (!%p3584_p5), %vm915_vm3, %v2986_v56, 0.0 }
 0xbf4   : > { %2999 = vadd.xlane.f32.xlu0 %v2998_v57 }
 0xc81   : > { %v3000_v59 = vpop.xlane.xlu0 %2999 }
 0xc82   : > { %v3002_v60 = vmul.f32 0.03125, %v3000_v59 }
 0xc84   : > { %v3003_v62 = vsub.f32 %v2983_v53, %v3002_v60  ;;  %v3587_v53 = vld [vmem:[%s4912_s7] ss:$0 sm:$0xff] }
 0xc86   : > { %v3004_v63 = vmul.f32 %v3003_v62, %v3003_v62 }
 0xc88   : > { %3006 = vrot.lane.b32.xlu0 %v3004_v63, %s4477_s10 }
 0xcfa   : > { %v3007_v0 = vpop.permute.xlu0 %3006 }
 0xcfb   : > { %v3009_v1 = vsel %vm915_vm3, %v3007_v0, 0.0 }
 0xcfc   : > { %3010 = vadd.xlane.f32.xlu1 %v3009_v1 }
 0xd0d   : > { %3032 = vrot.lane.b32.xlu1 %v3586_v2, %s4476_s9 }
 0xd89   : > { %v3011_v7 = vpop.xlane.xlu1 %3010 }
 0xd8a   : > { %v3012_v13 = vmul.f32 0.03125, %v3011_v7 }
 0xd8c   : > { %v3013_v14 = vadd.f32 1e-05, %v3012_v13 }
 0xd8d   : > { %v3033_v29 = vpop.permute.xlu1 %3032 }
 0xd8e   : > { %4455 = vrsqrt.f32 %v3013_v14 }
 0xd98   : > { %v4456_v34 = vpop.eup %4455 }
 0xd99   : > { %v3015_v38 = vmul.f32 %v4456_v34, %v3003_v62 }
 0xd9b   : > { %v3025_v43 = vmul.f32 %v3023_v6, %v3015_v38 }
 0xd9d   : > { %v3035_v5 = vadd.f32 %v3033_v29, %v3025_v43 }
 0xd9f   : > { %3048 = vrot.lane.b32.xlu1 %v3035_v5, %s4477_s10 }
 0xe11   : > { %v3049_v55 = vpop.permute.xlu1 %3048 }
 0xe12   : > { %v3050_v48 = vsel %vm915_vm3, %v3049_v55, 0 }
 0xe13   : > { %v3121_v3 = vand.u32 4294901760, %v3050_v48 }
 0xe15   : > { %v3122_v50 = vsub.f32 %v3050_v48, %v3121_v3 }
 0xe17   : > { %v3123_v49 = vand.u32 4294901760, %v3122_v50 }
 0xe19   : > { %4125 = vmatmul.mubr.f32.vlgmr.msra.gmra.mrb[0].mxu0 %v3123_v49  ;;  %v3124_v61 = vsub.f32 %v3122_v50, %v3123_v49 }
 0xe1a   : > { %4319 = vmatpush3.bf16.msra.mxu0 %v4318_v35  ;;  %4135 = vmatprep.mubr.msk.f32.mxu0 %vm4479_vm5, %v4480_v31 }
 0xe1b   : > { %v3125_v51 = vand.u32 4294901760, %v3124_v61  ;;  %4320 = vmatprep.subr.bf16.mxu0 %v4478_v4 }
 0xe1d   : > { %4092 = vmatmul.mubr.f32.vlgmr.msra.gmra.mrb[0].mxu1 %v3125_v51 }
 0xe1e   : > { %4301 = vmatpush3.bf16.msra.mxu1 %v4300_v44  ;;  %4322 = vmatpush3.bf16.msra.mxu0 %v4321_v45 }
 0xe1f   : > { %4302 = vmatprep.subr.bf16.mxu1 %v4478_v4  ;;  %4323 = vmatprep.subr.bf16.mxu0 %v4478_v4 }
 0xe20   : > { %4102 = vmatprep.mubr.msk.f32.mxu1 %vm4479_vm5, %v4480_v31 }
 0xe21   : > { %4136 = vmatmul.mubr.f32.vlgmr.msra.gmra.mrb[0].mxu0 %v3121_v3 }
 0xe22   : > { %4304 = vmatpush3.bf16.msra.mxu1 %v4303_v10  ;;  %4325 = vmatpush3.bf16.msra.mxu0 %v4861_v19 }
 0xe23   : > { %4305 = vmatprep.subr.bf16.mxu1 %v4478_v4  ;;  %4326 = vmatprep.subr.bf16.mxu0 %v4478_v4 }
 0xe24   : > { %4146 = vmatprep.mubr.msk.f32.mxu0 %vm4479_vm5, %v4480_v31 }
 0xe25   : > { %4103 = vmatmul.mubr.f32.vlgmr.msra.gmra.mrb[0].mxu1 %v3121_v3 }
 0xe26   : > { %4307 = vmatpush3.bf16.msra.mxu1 %v4306_v11  ;;  %4328 = vmatpush3.bf16.msra.mxu0 %v4297_v26 }
 0xe27   : > { %4308 = vmatprep.subr.bf16.mxu1 %v4478_v4  ;;  %4113 = vmatprep.mubr.msk.f32.mxu1 %vm4479_vm5, %v4480_v31 }
 0xe29   : > { %4147 = vmatmul.mubr.f32.vlgmr.msra.gmra.mrb[0].mxu0 %v3121_v3 }
 0xe2a   : > { %4310 = vmatpush3.bf16.msra.mxu1 %v4309_v12 }
 0xe2d   : > { %4114 = vmatmul.mubr.f32.vlgmr.msra.gmra.mrb[0].mxu1 %v3122_v50 }
 0xefc   : > { %v3533_v28 = vpop.f32.mrb[0].mxu0 }
 0xefd   : > { %v4148_v52 = vpop.f32.mrb[1].mxu0 }
 0xf00   : > { %v3298_v54 = vpop.f32.mrb[0].mxu1 }
 0xf01   : > { %v4393_v56 = vadd.f32 %v3587_v53, %v3298_v54  ;;  %v4115_v57 = vpop.f32.mrb[1].mxu1 }
 0xf03   : > { %v4394_v58 = vadd.f32 %v4393_v56, %v3533_v28 }
 0xf05   : > { %v3588_v59 = vmul.f32 -1.442695, %v4394_v58 }
 0xf07   : > { %4457 = vpow2.f32 %v3588_v59 }
 0xf11   : > { %v4458_v60 = vpop.eup %4457 }
 0xf12   : > { %v3540_v62 = vadd.f32 1.0, %v4458_v60 }
 0xf14   : > { %4459 = vrcp.f32 %v3540_v62 }
 0xf1e   : > { %v4460_v63 = vpop.eup %4459 }
 0xf1f   : > { %3543 = vst.msk [vmem:[%s4913_s8] sm:$0xff] %vm312_vm2, %v4460_v63 }
 0xf20 PF: > { %s18_s27 = sadd.s32 1, %s4467_s27  }
 0xf21   : > { %p15_p6 = scmp.ge.s32.totalorder %s18_s27, 4  }
 0xf23   :  { %17 = sbr.rel (!%p15_p6) target bundleno = 1 (0x1), region = 89 }

</bundles_post_ra>
